<compile_context>
chip_gen: v7x
topology: tpu7x:2x2x1
jax: 0.10.0
libtpu: 0.0.40
codegen_flags: <defaults>
</compile_context>

<pallas_src>
import jax
import jax.numpy as jnp
from jax.experimental import pallas as pl
from jax.experimental.pallas import tpu as pltpu

# ----------------------------- configs (small) ------------------------------
B, L, N, C = 2, 8, 4, 3          # history_data: [B, L, N, C]
FF = 32                          # feed_forward_dim (LSTM hidden size)
NUM_LAYERS = 2                   # lstm layers (kernel fuses exactly 2)
PRED_LEN = 4
OUTPUT_DIM = 2
LANE = 128


def _packed_cell(gates, c, F):
    """Packed two-layer LSTM cell update.

    gates: [BN, 8F] with lanes ordered (i0,i1,f0,f1,g0,g1,o0,o1), 0 = layer 0,
           1 = layer 1 (each slice F wide).
    c:     [BN, 2F] = [c0 | c1].
    Returns (h_new, c_new), both [BN, 2F] = [*0 | *1].
    """
    sig = jax.nn.sigmoid(gates)              # whole-register EUP pass
    g_g = jnp.tanh(gates[:, 4 * F:6 * F])    # tanh only on the g-gate lanes
    i_g = sig[:, 0:2 * F]
    f_g = sig[:, 2 * F:4 * F]
    o_g = sig[:, 6 * F:8 * F]
    c_new = f_g * c + i_g * g_g
    h_new = o_g * jnp.tanh(c_new)
    return h_new, c_new


def lstm_model_kernel(base_ref, wrec_ref, whead_ref, out_ref):
    """base_ref : [(L+1)*BN, 8F] gate base, time-major blocks of BN rows.
                  Block t, layer-0 lanes = x(t) projection (conv+w_ih0+bias
                  folded; zeros in the last block); layer-1 lanes = layer-1
                  LSTM bias (zeros in block 0).
       wrec_ref : [2F, 8F] combined recurrent weights for the packed state
                  [h0|h1] -> gate-interleaved (i0,i1,f0,f1,g0,g1,o0,o1) lanes.
       whead_ref: [168, 128] head blob: rows 0:F w1 (lane-padded),
                  F:F+128 w2 (padded), row F+128 b1, row F+129 b2.
       out_ref  : [BN, 128] lane-dense (first PRED_LEN*OUTPUT_DIM cols valid).
    """
    F = FF
    BN = out_ref.shape[0]
    n_blocks = base_ref.shape[0] // BN       # L + 1

    # ---- block 0: packed state is zero, so the recurrent dot is skipped.
    # Layer-1 lanes of block 0 are zero => h1/c1 stay exactly zero.
    h, c = _packed_cell(base_ref[0:BN, :],
                        jnp.zeros((BN, 2 * F), jnp.float32), F)

    # ---- fused 2-layer recurrence: one [BN,2F]x[2F,8F] MXU pass per step ----
    wrec = wrec_ref[...]                     # 16 vregs, only live during loop
    for t in range(1, n_blocks):             # static unroll (L = 8 steps)
        gates = base_ref[t * BN:(t + 1) * BN, :] + jnp.dot(
            h, wrec, preferred_element_type=jnp.float32)
        h, c = _packed_cell(gates, c, F)

    h1_last = h[:, F:2 * F]                  # layer-1 hidden at final timestep

    # ---- head weights loaded only after the recurrence (short live ranges) --
    w1p = whead_ref[0:F, :]                  # [F, 128]
    w2p = whead_ref[F:F + LANE, :]           # [128, 128]
    b1h = whead_ref[F + LANE:F + LANE + 1, :]
    b2h = whead_ref[F + LANE + 1:F + LANE + 2, :]
    y1 = jnp.maximum(
        jnp.dot(h1_last, w1p, preferred_element_type=jnp.float32) + b1h, 0.0)
    out_ref[...] = jnp.dot(y1, w2p, preferred_element_type=jnp.float32) + b2h


# --------------------------- one-time param packing -------------------------
def _interleave_gates(w_l0, w_l1, F):
    """[rows,4F](i,f,g,o) x2 -> [rows,8F] with lanes (i0,i1,f0,f1,g0,g1,o0,o1)."""
    rows = w_l0.shape[0]
    return jnp.stack([w_l0.reshape(rows, 4, F), w_l1.reshape(rows, 4, F)],
                     axis=2).reshape(rows, 8 * F)


def pack_params(p):
    """Precompute all kernel-side constants ONCE (outside the per-call path)."""
    F = FF
    hdim = F // 4
    po = PRED_LEN * OUTPUT_DIM

    # Fold the 1x1 conv into the layer-0 input projection (used in jitted glue).
    w_in0 = p["conv_w"] @ p["w_ih"][0]                       # [C, 4F]
    b_eff0 = p["conv_b"] @ p["w_ih"][0] + p["b_l"][0]        # [1, 4F]

    # Combined recurrent weight: packed state [h0|h1] -> interleaved gates.
    wrec = jnp.concatenate(
        [_interleave_gates(p["w_hh"][0], p["w_ih"][1], F),   # h0 rows
         _interleave_gates(jnp.zeros_like(p["w_hh"][1]), p["w_hh"][1], F)],
        axis=0)                                              # [2F, 8F]

    # Lane-padded MLP head packed into one blob (weights + biases).
    w1p = jnp.pad(p["w1"], ((0, 0), (0, LANE - hdim)))           # [F, 128]
    w2p = jnp.pad(p["w2"], ((0, LANE - hdim), (0, LANE - po)))   # [128, 128]
    b1h = jnp.pad(p["b1"], ((0, 0), (0, LANE - hdim)))           # [1, 128]
    b2h = jnp.pad(p["b2"], ((0, 0), (0, LANE - po)))             # [1, 128]
    whead = jnp.concatenate(
        [w1p, w2p, b1h, b2h, jnp.zeros((6, LANE), jnp.float32)], axis=0)

    return {"w_in0": w_in0, "b_eff0": b_eff0, "b1": p["b_l"][1],
            "wrec": wrec, "whead": whead}


# ------------------------------- jitted forward -----------------------------
@jax.jit
def model_forward(history_data, packed):
    F = FF
    b, l, n, c = history_data.shape
    bn = b * n
    po = PRED_LEN * OUTPUT_DIM

    # [B, L, N, C] -> time-major [L*BN, C] (b-major, n-minor inside each block).
    x = jnp.transpose(history_data, (1, 0, 2, 3)).reshape(l * bn, c)
    x = x.astype(jnp.float32)

    # Hoisted layer-0 input projection (conv folded in), fused with the layout
    # transform in one XLA fusion.  Result shaped per-gate for interleaving.
    gx = (x @ packed["w_in0"] + packed["b_eff0"]).reshape(l, bn, 4, F)

    # Interleaved gate base, L+1 time blocks:
    #   layer-0 lanes: gx(t) for t<L, zeros for the extra last block
    #   layer-1 lanes: zeros for block 0, layer-1 bias for blocks 1..L
    zeros_blk = jnp.zeros((1, bn, 4, F), jnp.float32)
    gx_blocks = jnp.concatenate([gx, zeros_blk], axis=0)          # [L+1,BN,4,F]
    b1_blocks = jnp.concatenate(
        [zeros_blk,
         jnp.broadcast_to(packed["b1"].reshape(1, 1, 4, F), (l, bn, 4, F))],
        axis=0)                                                   # [L+1,BN,4,F]
    base = jnp.stack([gx_blocks, b1_blocks], axis=3)              # [L+1,BN,4,2,F]
    base = base.reshape((l + 1) * bn, 8 * F)                      # [72, 256]

    # Note: at this tiny BN the whole problem is one vreg tall, so the call is
    # gridless.  When BN scales, add grid=(BN//block,) with
    # dimension_semantics=("parallel",) to use v7x's second TensorCore and size
    # blocks against its 64 MiB VMEM (128 MiB on v5e/v6e).
    out = pl.pallas_call(
        lstm_model_kernel,
        out_shape=jax.ShapeDtypeStruct((bn, LANE), jnp.float32),
        in_specs=[pl.BlockSpec(memory_space=pltpu.MemorySpace.VMEM)] * 3,
        out_specs=pl.BlockSpec(memory_space=pltpu.MemorySpace.VMEM),
    )(base, packed["wrec"], packed["whead"])

    # [B*N, 128] -> [B*N, P*O] -> [B, N, P, O] -> [B, P, N, O]
    return out[:, :po].reshape(b, n, PRED_LEN, OUTPUT_DIM).transpose(0, 2, 1, 3)


# --------------------------------- params -----------------------------------
def init_params(key):
    ks = jax.random.split(key, 10)
    s = 0.1
    return {
        # conv weight stored [C, F] (PyTorch [F, C, 1, 1] transposed)
        "conv_w": s * jax.random.normal(ks[0], (C, FF), jnp.float32),
        "conv_b": s * jax.random.normal(ks[1], (1, FF), jnp.float32),
        # LSTM weights stored input-major: [layers, F, 4F], gate order (i,f,g,o)
        # with bias = b_ih + b_hh
        "w_ih": s * jax.random.normal(ks[2], (NUM_LAYERS, FF, 4 * FF), jnp.float32),
        "w_hh": s * jax.random.normal(ks[3], (NUM_LAYERS, FF, 4 * FF), jnp.float32),
        "b_l": s * jax.random.normal(ks[4], (NUM_LAYERS, 1, 4 * FF), jnp.float32),
        "w1": s * jax.random.normal(ks[5], (FF, FF // 4), jnp.float32),
        "b1": s * jax.random.normal(ks[6], (1, FF // 4), jnp.float32),
        "w2": s * jax.random.normal(ks[7], (FF // 4, PRED_LEN * OUTPUT_DIM), jnp.float32),
        "b2": s * jax.random.normal(ks[8], (1, PRED_LEN * OUTPUT_DIM), jnp.float32),
    }


def reference_forward(history_data, p):
    """Pure-JAX reference of the same math (unfused/unfolded) for checking."""
    b, l, n, c = history_data.shape
    x = jnp.transpose(history_data, (0, 2, 1, 3)).reshape(b * n, l, c)
    seq = x.reshape(b * n * l, c) @ p["conv_w"] + p["conv_b"]
    inp = seq.reshape(b * n, l, FF)
    h = jnp.zeros((b * n, FF), jnp.float32)
    for layer in range(NUM_LAYERS):
        h = jnp.zeros((b * n, FF), jnp.float32)
        cst = jnp.zeros((b * n, FF), jnp.float32)
        outs = []
        for t in range(l):
            gates = (inp[:, t, :] @ p["w_ih"][layer]
                     + h @ p["w_hh"][layer] + p["b_l"][layer])
            i_g = jax.nn.sigmoid(gates[:, :FF])
            f_g = jax.nn.sigmoid(gates[:, FF:2 * FF])
            g_g = jnp.tanh(gates[:, 2 * FF:3 * FF])
            o_g = jax.nn.sigmoid(gates[:, 3 * FF:])
            cst = f_g * cst + i_g * g_g
            h = o_g * jnp.tanh(cst)
            outs.append(h)
        inp = jnp.stack(outs, axis=1)
    y1 = jnp.maximum(h @ p["w1"] + p["b1"], 0.0)
    y2 = y1 @ p["w2"] + p["b2"]
    return y2.reshape(b, n, PRED_LEN, OUTPUT_DIM).transpose(0, 2, 1, 3)


if __name__ == "__main__":
    assert NUM_LAYERS == 2, "kernel fuses exactly two LSTM layers"
    key = jax.random.PRNGKey(0)
    k_x, k_p = jax.random.split(key)
    history_data = jax.random.normal(k_x, (B, L, N, C), jnp.float32)
    params = init_params(k_p)

    packed = pack_params(params)              # one-time, outside per-call path

    out = jax.block_until_ready(model_forward(history_data, packed))
    ref = reference_forward(history_data, params)

    assert out.shape == (B, PRED_LEN, N, OUTPUT_DIM), out.shape
    assert jnp.allclose(out, ref, atol=1e-4, rtol=1e-4), "mismatch vs reference"

    print("KERNEL_OK")
</pallas_src>

<mosaic_0001>
module attributes {stable_mosaic.version = 11 : i64} {
  func.func @lstm_model_kernel(%arg0: memref<72x256xf32, #tpu.memory_space<vmem>>, %arg1: memref<64x256xf32, #tpu.memory_space<vmem>>, %arg2: memref<168x128xf32, #tpu.memory_space<vmem>>, %arg3: memref<8x128xf32, #tpu.memory_space<vmem>>) attributes {dimension_semantics = [], scalar_prefetch = 0 : i64, scratch_operands = 0 : i64, tpu.core_type = #tpu.core_type<tc>} {
    %c0 = arith.constant 0 : index
    %c0_0 = arith.constant 0 : index
    %0 = vector.load %arg0[%c0, %c0_0] : memref<72x256xf32, #tpu.memory_space<vmem>>, vector<8x256xf32>
    %cst = arith.constant 0.000000e+00 : f32
    %1 = vector.broadcast %cst : f32 to vector<8x64xf32>
    %2 = arith.negf %0 : vector<8x256xf32>
    %3 = math.exp %2 : vector<8x256xf32>
    %cst_1 = arith.constant 1.000000e+00 : f32
    %4 = vector.broadcast %cst_1 : f32 to vector<8x256xf32>
    %5 = arith.addf %4, %3 : vector<8x256xf32>
    %6 = arith.divf %4, %5 : vector<8x256xf32>
    %7 = vector.extract_strided_slice %0 {offsets = [0, 128], sizes = [8, 64], strides = [1, 1]} : vector<8x256xf32> to vector<8x64xf32>
    %8 = math.tanh %7 : vector<8x64xf32>
    %9 = vector.extract_strided_slice %6 {offsets = [0, 0], sizes = [8, 64], strides = [1, 1]} : vector<8x256xf32> to vector<8x64xf32>
    %10 = vector.extract_strided_slice %6 {offsets = [0, 64], sizes = [8, 64], strides = [1, 1]} : vector<8x256xf32> to vector<8x64xf32>
    %11 = vector.extract_strided_slice %6 {offsets = [0, 192], sizes = [8, 64], strides = [1, 1]} : vector<8x256xf32> to vector<8x64xf32>
    %12 = arith.mulf %10, %1 : vector<8x64xf32>
    %13 = arith.mulf %9, %8 : vector<8x64xf32>
    %14 = arith.addf %12, %13 : vector<8x64xf32>
    %15 = math.tanh %14 : vector<8x64xf32>
    %16 = arith.mulf %11, %15 : vector<8x64xf32>
    %c0_2 = arith.constant 0 : index
    %c0_3 = arith.constant 0 : index
    %17 = vector.load %arg1[%c0_2, %c0_3] : memref<64x256xf32, #tpu.memory_space<vmem>>, vector<64x256xf32>
    %c8 = arith.constant 8 : index
    %c0_4 = arith.constant 0 : index
    %18 = vector.load %arg0[%c8, %c0_4] : memref<72x256xf32, #tpu.memory_space<vmem>>, vector<8x256xf32>
    %cst_5 = arith.constant dense<0.000000e+00> : vector<8x256xf32>
    %19 = tpu.matmul %16, %17, %cst_5 {dimension_numbers = #tpu.dot_dimension_numbers<[1], [0], [0], [1], [0, 0, 1, 1], [], []>} : vector<8x64xf32>, vector<64x256xf32>, vector<8x256xf32> -> vector<8x256xf32>
    %20 = arith.addf %18, %19 : vector<8x256xf32>
    %21 = arith.negf %20 : vector<8x256xf32>
    %22 = math.exp %21 : vector<8x256xf32>
    %cst_6 = arith.constant 1.000000e+00 : f32
    %23 = vector.broadcast %cst_6 : f32 to vector<8x256xf32>
    %24 = arith.addf %23, %22 : vector<8x256xf32>
    %25 = arith.divf %23, %24 : vector<8x256xf32>
    %26 = vector.extract_strided_slice %20 {offsets = [0, 128], sizes = [8, 64], strides = [1, 1]} : vector<8x256xf32> to vector<8x64xf32>
    %27 = math.tanh %26 : vector<8x64xf32>
    %28 = vector.extract_strided_slice %25 {offsets = [0, 0], sizes = [8, 64], strides = [1, 1]} : vector<8x256xf32> to vector<8x64xf32>
    %29 = vector.extract_strided_slice %25 {offsets = [0, 64], sizes = [8, 64], strides = [1, 1]} : vector<8x256xf32> to vector<8x64xf32>
    %30 = vector.extract_strided_slice %25 {offsets = [0, 192], sizes = [8, 64], strides = [1, 1]} : vector<8x256xf32> to vector<8x64xf32>
    %31 = arith.mulf %29, %14 : vector<8x64xf32>
    %32 = arith.mulf %28, %27 : vector<8x64xf32>
    %33 = arith.addf %31, %32 : vector<8x64xf32>
    %34 = math.tanh %33 : vector<8x64xf32>
    %35 = arith.mulf %30, %34 : vector<8x64xf32>
    %c16 = arith.constant 16 : index
    %c0_7 = arith.constant 0 : index
    %36 = vector.load %arg0[%c16, %c0_7] : memref<72x256xf32, #tpu.memory_space<vmem>>, vector<8x256xf32>
    %cst_8 = arith.constant dense<0.000000e+00> : vector<8x256xf32>
    %37 = tpu.matmul %35, %17, %cst_8 {dimension_numbers = #tpu.dot_dimension_numbers<[1], [0], [0], [1], [0, 0, 1, 1], [], []>} : vector<8x64xf32>, vector<64x256xf32>, vector<8x256xf32> -> vector<8x256xf32>
    %38 = arith.addf %36, %37 : vector<8x256xf32>
    %39 = arith.negf %38 : vector<8x256xf32>
    %40 = math.exp %39 : vector<8x256xf32>
    %cst_9 = arith.constant 1.000000e+00 : f32
    %41 = vector.broadcast %cst_9 : f32 to vector<8x256xf32>
    %42 = arith.addf %41, %40 : vector<8x256xf32>
    %43 = arith.divf %41, %42 : vector<8x256xf32>
    %44 = vector.extract_strided_slice %38 {offsets = [0, 128], sizes = [8, 64], strides = [1, 1]} : vector<8x256xf32> to vector<8x64xf32>
    %45 = math.tanh %44 : vector<8x64xf32>
    %46 = vector.extract_strided_slice %43 {offsets = [0, 0], sizes = [8, 64], strides = [1, 1]} : vector<8x256xf32> to vector<8x64xf32>
    %47 = vector.extract_strided_slice %43 {offsets = [0, 64], sizes = [8, 64], strides = [1, 1]} : vector<8x256xf32> to vector<8x64xf32>
    %48 = vector.extract_strided_slice %43 {offsets = [0, 192], sizes = [8, 64], strides = [1, 1]} : vector<8x256xf32> to vector<8x64xf32>
    %49 = arith.mulf %47, %33 : vector<8x64xf32>
    %50 = arith.mulf %46, %45 : vector<8x64xf32>
    %51 = arith.addf %49, %50 : vector<8x64xf32>
    %52 = math.tanh %51 : vector<8x64xf32>
    %53 = arith.mulf %48, %52 : vector<8x64xf32>
    %c24 = arith.constant 24 : index
    %c0_10 = arith.constant 0 : index
    %54 = vector.load %arg0[%c24, %c0_10] : memref<72x256xf32, #tpu.memory_space<vmem>>, vector<8x256xf32>
    %cst_11 = arith.constant dense<0.000000e+00> : vector<8x256xf32>
    %55 = tpu.matmul %53, %17, %cst_11 {dimension_numbers = #tpu.dot_dimension_numbers<[1], [0], [0], [1], [0, 0, 1, 1], [], []>} : vector<8x64xf32>, vector<64x256xf32>, vector<8x256xf32> -> vector<8x256xf32>
    %56 = arith.addf %54, %55 : vector<8x256xf32>
    %57 = arith.negf %56 : vector<8x256xf32>
    %58 = math.exp %57 : vector<8x256xf32>
    %cst_12 = arith.constant 1.000000e+00 : f32
    %59 = vector.broadcast %cst_12 : f32 to vector<8x256xf32>
    %60 = arith.addf %59, %58 : vector<8x256xf32>
    %61 = arith.divf %59, %60 : vector<8x256xf32>
    %62 = vector.extract_strided_slice %56 {offsets = [0, 128], sizes = [8, 64], strides = [1, 1]} : vector<8x256xf32> to vector<8x64xf32>
    %63 = math.tanh %62 : vector<8x64xf32>
    %64 = vector.extract_strided_slice %61 {offsets = [0, 0], sizes = [8, 64], strides = [1, 1]} : vector<8x256xf32> to vector<8x64xf32>
    %65 = vector.extract_strided_slice %61 {offsets = [0, 64], sizes = [8, 64], strides = [1, 1]} : vector<8x256xf32> to vector<8x64xf32>
    %66 = vector.extract_strided_slice %61 {offsets = [0, 192], sizes = [8, 64], strides = [1, 1]} : vector<8x256xf32> to vector<8x64xf32>
    %67 = arith.mulf %65, %51 : vector<8x64xf32>
    %68 = arith.mulf %64, %63 : vector<8x64xf32>
    %69 = arith.addf %67, %68 : vector<8x64xf32>
    %70 = math.tanh %69 : vector<8x64xf32>
    %71 = arith.mulf %66, %70 : vector<8x64xf32>
    %c32 = arith.constant 32 : index
    %c0_13 = arith.constant 0 : index
    %72 = vector.load %arg0[%c32, %c0_13] : memref<72x256xf32, #tpu.memory_space<vmem>>, vector<8x256xf32>
    %cst_14 = arith.constant dense<0.000000e+00> : vector<8x256xf32>
    %73 = tpu.matmul %71, %17, %cst_14 {dimension_numbers = #tpu.dot_dimension_numbers<[1], [0], [0], [1], [0, 0, 1, 1], [], []>} : vector<8x64xf32>, vector<64x256xf32>, vector<8x256xf32> -> vector<8x256xf32>
    %74 = arith.addf %72, %73 : vector<8x256xf32>
    %75 = arith.negf %74 : vector<8x256xf32>
    %76 = math.exp %75 : vector<8x256xf32>
    %cst_15 = arith.constant 1.000000e+00 : f32
    %77 = vector.broadcast %cst_15 : f32 to vector<8x256xf32>
    %78 = arith.addf %77, %76 : vector<8x256xf32>
    %79 = arith.divf %77, %78 : vector<8x256xf32>
    %80 = vector.extract_strided_slice %74 {offsets = [0, 128], sizes = [8, 64], strides = [1, 1]} : vector<8x256xf32> to vector<8x64xf32>
    %81 = math.tanh %80 : vector<8x64xf32>
    %82 = vector.extract_strided_slice %79 {offsets = [0, 0], sizes = [8, 64], strides = [1, 1]} : vector<8x256xf32> to vector<8x64xf32>
    %83 = vector.extract_strided_slice %79 {offsets = [0, 64], sizes = [8, 64], strides = [1, 1]} : vector<8x256xf32> to vector<8x64xf32>
    %84 = vector.extract_strided_slice %79 {offsets = [0, 192], sizes = [8, 64], strides = [1, 1]} : vector<8x256xf32> to vector<8x64xf32>
    %85 = arith.mulf %83, %69 : vector<8x64xf32>
    %86 = arith.mulf %82, %81 : vector<8x64xf32>
    %87 = arith.addf %85, %86 : vector<8x64xf32>
    %88 = math.tanh %87 : vector<8x64xf32>
    %89 = arith.mulf %84, %88 : vector<8x64xf32>
    %c40 = arith.constant 40 : index
    %c0_16 = arith.constant 0 : index
    %90 = vector.load %arg0[%c40, %c0_16] : memref<72x256xf32, #tpu.memory_space<vmem>>, vector<8x256xf32>
    %cst_17 = arith.constant dense<0.000000e+00> : vector<8x256xf32>
    %91 = tpu.matmul %89, %17, %cst_17 {dimension_numbers = #tpu.dot_dimension_numbers<[1], [0], [0], [1], [0, 0, 1, 1], [], []>} : vector<8x64xf32>, vector<64x256xf32>, vector<8x256xf32> -> vector<8x256xf32>
    %92 = arith.addf %90, %91 : vector<8x256xf32>
    %93 = arith.negf %92 : vector<8x256xf32>
    %94 = math.exp %93 : vector<8x256xf32>
    %cst_18 = arith.constant 1.000000e+00 : f32
    %95 = vector.broadcast %cst_18 : f32 to vector<8x256xf32>
    %96 = arith.addf %95, %94 : vector<8x256xf32>
    %97 = arith.divf %95, %96 : vector<8x256xf32>
    %98 = vector.extract_strided_slice %92 {offsets = [0, 128], sizes = [8, 64], strides = [1, 1]} : vector<8x256xf32> to vector<8x64xf32>
    %99 = math.tanh %98 : vector<8x64xf32>
    %100 = vector.extract_strided_slice %97 {offsets = [0, 0], sizes = [8, 64], strides = [1, 1]} : vector<8x256xf32> to vector<8x64xf32>
    %101 = vector.extract_strided_slice %97 {offsets = [0, 64], sizes = [8, 64], strides = [1, 1]} : vector<8x256xf32> to vector<8x64xf32>
    %102 = vector.extract_strided_slice %97 {offsets = [0, 192], sizes = [8, 64], strides = [1, 1]} : vector<8x256xf32> to vector<8x64xf32>
    %103 = arith.mulf %101, %87 : vector<8x64xf32>
    %104 = arith.mulf %100, %99 : vector<8x64xf32>
    %105 = arith.addf %103, %104 : vector<8x64xf32>
    %106 = math.tanh %105 : vector<8x64xf32>
    %107 = arith.mulf %102, %106 : vector<8x64xf32>
    %c48 = arith.constant 48 : index
    %c0_19 = arith.constant 0 : index
    %108 = vector.load %arg0[%c48, %c0_19] : memref<72x256xf32, #tpu.memory_space<vmem>>, vector<8x256xf32>
    %cst_20 = arith.constant dense<0.000000e+00> : vector<8x256xf32>
    %109 = tpu.matmul %107, %17, %cst_20 {dimension_numbers = #tpu.dot_dimension_numbers<[1], [0], [0], [1], [0, 0, 1, 1], [], []>} : vector<8x64xf32>, vector<64x256xf32>, vector<8x256xf32> -> vector<8x256xf32>
    %110 = arith.addf %108, %109 : vector<8x256xf32>
    %111 = arith.negf %110 : vector<8x256xf32>
    %112 = math.exp %111 : vector<8x256xf32>
    %cst_21 = arith.constant 1.000000e+00 : f32
    %113 = vector.broadcast %cst_21 : f32 to vector<8x256xf32>
    %114 = arith.addf %113, %112 : vector<8x256xf32>
    %115 = arith.divf %113, %114 : vector<8x256xf32>
    %116 = vector.extract_strided_slice %110 {offsets = [0, 128], sizes = [8, 64], strides = [1, 1]} : vector<8x256xf32> to vector<8x64xf32>
    %117 = math.tanh %116 : vector<8x64xf32>
    %118 = vector.extract_strided_slice %115 {offsets = [0, 0], sizes = [8, 64], strides = [1, 1]} : vector<8x256xf32> to vector<8x64xf32>
    %119 = vector.extract_strided_slice %115 {offsets = [0, 64], sizes = [8, 64], strides = [1, 1]} : vector<8x256xf32> to vector<8x64xf32>
    %120 = vector.extract_strided_slice %115 {offsets = [0, 192], sizes = [8, 64], strides = [1, 1]} : vector<8x256xf32> to vector<8x64xf32>
    %121 = arith.mulf %119, %105 : vector<8x64xf32>
    %122 = arith.mulf %118, %117 : vector<8x64xf32>
    %123 = arith.addf %121, %122 : vector<8x64xf32>
    %124 = math.tanh %123 : vector<8x64xf32>
    %125 = arith.mulf %120, %124 : vector<8x64xf32>
    %c56 = arith.constant 56 : index
    %c0_22 = arith.constant 0 : index
    %126 = vector.load %arg0[%c56, %c0_22] : memref<72x256xf32, #tpu.memory_space<vmem>>, vector<8x256xf32>
    %cst_23 = arith.constant dense<0.000000e+00> : vector<8x256xf32>
    %127 = tpu.matmul %125, %17, %cst_23 {dimension_numbers = #tpu.dot_dimension_numbers<[1], [0], [0], [1], [0, 0, 1, 1], [], []>} : vector<8x64xf32>, vector<64x256xf32>, vector<8x256xf32> -> vector<8x256xf32>
    %128 = arith.addf %126, %127 : vector<8x256xf32>
    %129 = arith.negf %128 : vector<8x256xf32>
    %130 = math.exp %129 : vector<8x256xf32>
    %cst_24 = arith.constant 1.000000e+00 : f32
    %131 = vector.broadcast %cst_24 : f32 to vector<8x256xf32>
    %132 = arith.addf %131, %130 : vector<8x256xf32>
    %133 = arith.divf %131, %132 : vector<8x256xf32>
    %134 = vector.extract_strided_slice %128 {offsets = [0, 128], sizes = [8, 64], strides = [1, 1]} : vector<8x256xf32> to vector<8x64xf32>
    %135 = math.tanh %134 : vector<8x64xf32>
    %136 = vector.extract_strided_slice %133 {offsets = [0, 0], sizes = [8, 64], strides = [1, 1]} : vector<8x256xf32> to vector<8x64xf32>
    %137 = vector.extract_strided_slice %133 {offsets = [0, 64], sizes = [8, 64], strides = [1, 1]} : vector<8x256xf32> to vector<8x64xf32>
    %138 = vector.extract_strided_slice %133 {offsets = [0, 192], sizes = [8, 64], strides = [1, 1]} : vector<8x256xf32> to vector<8x64xf32>
    %139 = arith.mulf %137, %123 : vector<8x64xf32>
    %140 = arith.mulf %136, %135 : vector<8x64xf32>
    %141 = arith.addf %139, %140 : vector<8x64xf32>
    %142 = math.tanh %141 : vector<8x64xf32>
    %143 = arith.mulf %138, %142 : vector<8x64xf32>
    %c64 = arith.constant 64 : index
    %c0_25 = arith.constant 0 : index
    %144 = vector.load %arg0[%c64, %c0_25] : memref<72x256xf32, #tpu.memory_space<vmem>>, vector<8x256xf32>
    %cst_26 = arith.constant dense<0.000000e+00> : vector<8x256xf32>
    %145 = tpu.matmul %143, %17, %cst_26 {dimension_numbers = #tpu.dot_dimension_numbers<[1], [0], [0], [1], [0, 0, 1, 1], [], []>} : vector<8x64xf32>, vector<64x256xf32>, vector<8x256xf32> -> vector<8x256xf32>
    %146 = arith.addf %144, %145 : vector<8x256xf32>
    %147 = arith.negf %146 : vector<8x256xf32>
    %148 = math.exp %147 : vector<8x256xf32>
    %cst_27 = arith.constant 1.000000e+00 : f32
    %149 = vector.broadcast %cst_27 : f32 to vector<8x256xf32>
    %150 = arith.addf %149, %148 : vector<8x256xf32>
    %151 = arith.divf %149, %150 : vector<8x256xf32>
    %152 = vector.extract_strided_slice %146 {offsets = [0, 128], sizes = [8, 64], strides = [1, 1]} : vector<8x256xf32> to vector<8x64xf32>
    %153 = math.tanh %152 : vector<8x64xf32>
    %154 = vector.extract_strided_slice %151 {offsets = [0, 0], sizes = [8, 64], strides = [1, 1]} : vector<8x256xf32> to vector<8x64xf32>
    %155 = vector.extract_strided_slice %151 {offsets = [0, 64], sizes = [8, 64], strides = [1, 1]} : vector<8x256xf32> to vector<8x64xf32>
    %156 = vector.extract_strided_slice %151 {offsets = [0, 192], sizes = [8, 64], strides = [1, 1]} : vector<8x256xf32> to vector<8x64xf32>
    %157 = arith.mulf %155, %141 : vector<8x64xf32>
    %158 = arith.mulf %154, %153 : vector<8x64xf32>
    %159 = arith.addf %157, %158 : vector<8x64xf32>
    %160 = math.tanh %159 : vector<8x64xf32>
    %161 = arith.mulf %156, %160 : vector<8x64xf32>
    %162 = vector.extract_strided_slice %161 {offsets = [0, 32], sizes = [8, 32], strides = [1, 1]} : vector<8x64xf32> to vector<8x32xf32>
    %c0_28 = arith.constant 0 : index
    %c0_29 = arith.constant 0 : index
    %163 = vector.load %arg2[%c0_28, %c0_29] : memref<168x128xf32, #tpu.memory_space<vmem>>, vector<32x128xf32>
    %c32_30 = arith.constant 32 : index
    %c0_31 = arith.constant 0 : index
    %164 = vector.load %arg2[%c32_30, %c0_31] : memref<168x128xf32, #tpu.memory_space<vmem>>, vector<128x128xf32>
    %c160 = arith.constant 160 : index
    %c0_32 = arith.constant 0 : index
    %165 = vector.load %arg2[%c160, %c0_32] : memref<168x128xf32, #tpu.memory_space<vmem>>, vector<1x128xf32>
    %c161 = arith.constant 161 : index
    %c0_33 = arith.constant 0 : index
    %166 = vector.load %arg2[%c161, %c0_33] : memref<168x128xf32, #tpu.memory_space<vmem>>, vector<1x128xf32>
    %cst_34 = arith.constant dense<0.000000e+00> : vector<8x128xf32>
    %167 = tpu.matmul %162, %163, %cst_34 {dimension_numbers = #tpu.dot_dimension_numbers<[1], [0], [0], [1], [0, 0, 1, 1], [], []>} : vector<8x32xf32>, vector<32x128xf32>, vector<8x128xf32> -> vector<8x128xf32>
    %168 = vector.broadcast %165 : vector<1x128xf32> to vector<8x128xf32>
    %169 = arith.addf %167, %168 : vector<8x128xf32>
    %cst_35 = arith.constant 0.000000e+00 : f32
    %170 = vector.broadcast %cst_35 : f32 to vector<8x128xf32>
    %171 = arith.maximumf %169, %170 : vector<8x128xf32>
    %cst_36 = arith.constant dense<0.000000e+00> : vector<8x128xf32>
    %172 = tpu.matmul %171, %164, %cst_36 {dimension_numbers = #tpu.dot_dimension_numbers<[1], [0], [0], [1], [0, 0, 1, 1], [], []>} : vector<8x128xf32>, vector<128x128xf32>, vector<8x128xf32> -> vector<8x128xf32>
    %173 = vector.broadcast %166 : vector<1x128xf32> to vector<8x128xf32>
    %174 = arith.addf %172, %173 : vector<8x128xf32>
    %c0_37 = arith.constant 0 : index
    %c0_38 = arith.constant 0 : index
    %175 = vector.load %arg3[%c0_37, %c0_38] : memref<8x128xf32, #tpu.memory_space<vmem>>, vector<8x128xf32>
    tpu.vector_store %arg3[%c0_37, %c0_38], %174 {strides = array<i32>} : memref<8x128xf32, #tpu.memory_space<vmem>>, vector<8x128xf32>,
    return
  }
}

</mosaic_0001>

<bundles_post_ra>
// kernel: model_forward.1
= control target key start
LH: loop header
LB: loop body
LE: loop exit
PB: predicated region body
PF: predicated region fallthrough
CT: control target
= control target key end

     0   :  { %s1421_s16 = smov 64   ;;  %v1422_v11 = vmov 0.0   ;;  %vm59_vm0 = vcmask 523264   ;;  %vm1424_vm1 = vmmov 0   ;;  %s1425_s26 = smov 32   ;;  %vm900_vm2 = vcmask 261120   ;;  %s1732_s0 = inlined_call_operand.vmem [shape: f32[72,256], index: 0, kind: input, shape index: {}]   ;;  %s1733_s1 = inlined_call_operand.vmem [shape: f32[64,256], index: 1, kind: input, shape index: {}]   ;;  %s1734_s2 = inlined_call_operand.vmem [shape: f32[168,128], index: 2, kind: input, shape index: {}]   ;;  %s1735_s3 = inlined_call_operand.vmem [shape: f32[8,128], index: 3, kind: output, shape index: {}]  }
   0x1   :  { %v14_v0 = vld [vmem:[%s1732_s0] sm:$0xff]  ;;  %v15_v2 = vld [vmem:[%s1732_s0 + $0x8] sm:$0xff]  ;;  %v41_v9 = vld [vmem:[%s1733_s1 + $0x18] sm:$0xff]  ;;  %126 = vmatprep.mubr.f32.mxu0 %v1422_v11  ;;  %432 = vmatprep.mubr.f32.mxu1 %v1422_v11 }
   0x2   :  { %v1053_v1 = vmul.f32 -1.442695, %v14_v0  ;;  %v39_v8 = vld [vmem:[%s1733_s1 + $0x8] sm:$0xff]  ;;  %v38_v10 = vld [vmem:[%s1733_s1] sm:$0xff]  ;;  %v40_v13 = vld [vmem:[%s1733_s1 + $0x10] sm:$0xff] }
   0x3   :  { %v1464_v12 = vpack.c.bf16 %v41_v9, %v39_v8  ;;  %v43_v14 = vld [vmem:[%s1733_s1 + $0x28] sm:$0xff]  ;;  %v45_v15 = vld [vmem:[%s1733_s1 + $0x38] sm:$0xff]  ;;  %v1475_v16 = vpack.c.bf16 %v40_v13, %v38_v10  ;;  %v42_v18 = vld [vmem:[%s1733_s1 + $0x20] sm:$0xff]  ;;  %v1054_v33 = vmul.f32 -1.442695, %v15_v2 }
   0x4   :  { %1313 = vpow2.f32 %v1053_v1  ;;  %v1477_v17 = vpack.c.bf16 %v45_v15, %v43_v14  ;;  %v44_v19 = vld [vmem:[%s1733_s1 + $0x30] sm:$0xff]  ;;  %v47_v20 = vld [vmem:[%s1733_s1 + $0x48] sm:$0xff]  ;;  %v49_v21 = vld [vmem:[%s1733_s1 + $0x58] sm:$0xff] }
   0x5   :  { %1315 = vtanh.f32 %v15_v2  ;;  %1151 = vmatprep.subr.bf16.mxu0 %v1464_v12  ;;  %1199 = vmatprep.subr.bf16.mxu1 %v1464_v12  ;;  %v1494_v22 = vpack.c.bf16 %v44_v19, %v42_v18  ;;  %v1498_v23 = vpack.c.bf16 %v49_v21, %v47_v20  ;;  %v46_v24 = vld [vmem:[%s1733_s1 + $0x40] sm:$0xff]  ;;  %v48_v25 = vld [vmem:[%s1733_s1 + $0x50] sm:$0xff]  ;;  %v51_v26 = vld [vmem:[%s1733_s1 + $0x68] sm:$0xff] }
   0x6   :  { %1153 = vmatpush1.bf16.msra.mxu0 %v1475_v16  ;;  %1201 = vmatpush1.bf16.msra.mxu1 %v1475_v16  ;;  %v53_v27 = vld [vmem:[%s1733_s1 + $0x78] sm:$0xff]  ;;  %v1514_v28 = vpack.c.bf16 %v48_v25, %v46_v24  ;;  %v50_v30 = vld [vmem:[%s1733_s1 + $0x60] sm:$0xff]  ;;  %v52_v31 = vld [vmem:[%s1733_s1 + $0x70] sm:$0xff] }
   0x7   :  { %1155 = vmatprep.subr.bf16.mxu0 %v1477_v17  ;;  %1203 = vmatprep.subr.bf16.mxu1 %v1477_v17  ;;  %v1518_v29 = vpack.c.bf16 %v53_v27, %v51_v26  ;;  %v1528_v32 = vpack.c.bf16 %v52_v31, %v50_v30  ;;  %v54_v43 = vld [vmem:[%s1732_s0 + $0x10] sm:$0xff]  ;;  %v55_v48 = vld [vmem:[%s1732_s0 + $0x18] sm:$0xff]  ;;  %v157_v1 = vld [vmem:[%s1732_s0 + $0x20] sm:$0xff] }
   0x8   :  { %v259_v31 = vld [vmem:[%s1732_s0 + $0x30] sm:$0xff] }
   0xa   :  { %1157 = vmatpush1.bf16.msra.mxu0 %v1494_v22  ;;  %1205 = vmatpush1.bf16.msra.mxu1 %v1494_v22 }
   0xb   :  { %1159 = vmatprep.subr.bf16.mxu0 %v1498_v23  ;;  %1207 = vmatprep.subr.bf16.mxu1 %v1498_v23 }
   0xe   :  { %v1314_v3 = vpop.eup %1313  ;;  %1161 = vmatpush1.bf16.msra.mxu0 %v1514_v28  ;;  %1209 = vmatpush1.bf16.msra.mxu1 %v1514_v28 }
   0xf   :  { %v22_v4 = vadd.f32 1.0, %v1314_v3  ;;  %v1316_v5 = vpop.eup %1315  ;;  %1163 = vmatprep.subr.bf16.mxu0 %v1518_v29  ;;  %1211 = vmatprep.subr.bf16.mxu1 %v1518_v29 }
  0x11   :  { %1317 = vrcp.f32 %v22_v4 }
  0x12   :  { %1165 = vmatpush1.bf16.msra.mxu0 %v1528_v32  ;;  %1213 = vmatpush1.bf16.msra.mxu1 %v1528_v32  ;;  %1319 = vpow2.f32 %v1054_v33 }
  0x13   :  { %1167 = vmatprep.subr.bf16.mxu0 %v1464_v12  ;;  %1231 = vmatprep.subr.bf16.mxu1 %v1464_v12 }
  0x1b   :  { %v1318_v6 = vpop.eup %1317 }
  0x1c   :  { %v30_v7 = vmul.f32 %v1318_v6, %v1316_v5  ;;  %v1320_v34 = vpop.eup %1319  ;;  %v29_v35 = vmul.f32 0.0, %v1318_v6  ;;  %v158_v6 = vld [vmem:[%s1732_s0 + $0x28] sm:$0xff] }
  0x1d   :  { %v23_v36 = vadd.f32 1.0, %v1320_v34 }
  0x1e   :  { %32 = vrot.lane.b32.xlu0 %v30_v7, %s1421_s16 }
  0x1f   :  { %1321 = vrcp.f32 %v23_v36 }
  0x29   :  { %v1322_v39 = vpop.eup %1321 }
  0x90   :  { %v33_v37 = vpop.permute.xlu0 %32 }
  0x91   :  { %v35_v38 = vadd.f32 %v33_v37, %v29_v35  ;;  %v260_v37 = vld [vmem:[%s1732_s0 + $0x38] sm:$0xff] }
  0x93   :  { %1323 = vtanh.f32 %v35_v38 }
  0x9d   :  { %v1324_v40 = vpop.eup %1323 }
  0x9e   :  { %v37_v41 = vmul.f32 %v1324_v40, %v1322_v39 }
  0xa0   :  { %57 = vrot.lane.b32.xlu0 %v37_v41, %s1421_s16 }
 0x112   :  { %v58_v42 = vpop.permute.xlu0 %57 }
 0x113   :  { %1055 = vmatmul.mubr.msk.f32.vlgmr.msra.gmra.mrb[0].mxu0 %vm59_vm0, %v58_v42 }
 0x114   :  { %1169 = vmatpush1.bf16.msra.mxu0 %v1475_v16  ;;  %228 = vmatprep.mubr.f32.mxu0 %v1422_v11 }
 0x115   :  { %1171 = vmatprep.subr.bf16.mxu0 %v1477_v17 }
 0x118   :  { %1173 = vmatpush1.bf16.msra.mxu0 %v1494_v22 }
 0x119   :  { %1175 = vmatprep.subr.bf16.mxu0 %v1498_v23 }
 0x11c   :  { %1177 = vmatpush1.bf16.msra.mxu0 %v1514_v28 }
 0x11d   :  { %1179 = vmatprep.subr.bf16.mxu0 %v1518_v29 }
 0x120   :  { %1181 = vmatpush1.bf16.msra.mxu0 %v1528_v32 }
 0x121   :  { %1183 = vmatprep.subr.bf16.mxu0 %v1464_v12 }
 0x1e6   :  { %v128_v44 = vpop.f32.mrb[0].mxu0 }
 0x1e7   :  { %v133_v45 = vadd.f32 %v128_v44, %v54_v43  ;;  %v130_v46 = vpop.f32.mrb[1].mxu0 }
 0x1e8   :  { %v134_v49 = vadd.f32 %v130_v46, %v55_v48 }
 0x1e9   :  { %v1056_v47 = vmul.f32 -1.442695, %v133_v45 }
 0x1ea   :  { %v1057_v55 = vmul.f32 -1.442695, %v134_v49 }
 0x1eb   :  { %1325 = vpow2.f32 %v1056_v47 }
 0x1ec   :  { %1327 = vtanh.f32 %v134_v49 }
 0x1f5   :  { %v1326_v50 = vpop.eup %1325 }
 0x1f6   :  { %v141_v51 = vadd.f32 1.0, %v1326_v50  ;;  %v1328_v52 = vpop.eup %1327 }
 0x1f8   :  { %1329 = vrcp.f32 %v141_v51 }
 0x1f9   :  { %1331 = vpow2.f32 %v1057_v55 }
 0x202   :  { %v1330_v53 = vpop.eup %1329 }
 0x203   :  { %v149_v54 = vmul.f32 %v1330_v53, %v1328_v52  ;;  %v1332_v56 = vpop.eup %1331  ;;  %v148_v58 = vmul.f32 %v1330_v53, %v35_v38 }
 0x204   :  { %v142_v57 = vadd.f32 1.0, %v1332_v56 }
 0x205   :  { %151 = vrot.lane.b32.xlu1 %v149_v54, %s1421_s16  ;;  %v361_v54 = vld [vmem:[%s1732_s0 + $0x40] sm:$0xff] }
 0x206   :  { %1333 = vrcp.f32 %v142_v57 }
 0x210   :  { %v1334_v61 = vpop.eup %1333 }
 0x277   :  { %v152_v59 = vpop.permute.xlu1 %151 }
 0x278   :  { %v154_v60 = vadd.f32 %v152_v59, %v148_v58  ;;  %v362_v59 = vld [vmem:[%s1732_s0 + $0x48] sm:$0xff] }
 0x27a   :  { %1335 = vtanh.f32 %v154_v60 }
 0x284   :  { %v1336_v62 = vpop.eup %1335 }
 0x285   :  { %v156_v63 = vmul.f32 %v1336_v62, %v1334_v61 }
 0x287   :  { %160 = vrot.lane.b32.xlu1 %v156_v63, %s1421_s16 }
 0x2f9   :  { %v161_v0 = vpop.permute.xlu1 %160 }
 0x2fa   :  { %1058 = vmatmul.mubr.msk.f32.vlgmr.msra.gmra.mrb[2].mxu0 %vm59_vm0, %v161_v0 }
 0x2fb   :  { %1185 = vmatpush1.bf16.msra.mxu0 %v1475_v16  ;;  %330 = vmatprep.mubr.f32.mxu0 %v1422_v11 }
 0x2fc   :  { %1187 = vmatprep.subr.bf16.mxu0 %v1477_v17 }
 0x2ff   :  { %1189 = vmatpush1.bf16.msra.mxu0 %v1494_v22 }
 0x300   :  { %1191 = vmatprep.subr.bf16.mxu0 %v1498_v23 }
 0x303   :  { %1193 = vmatpush1.bf16.msra.mxu0 %v1514_v28 }
 0x304   :  { %1195 = vmatprep.subr.bf16.mxu0 %v1518_v29 }
 0x307   :  { %1197 = vmatpush1.bf16.msra.mxu0 %v1528_v32 }
 0x308   :  { %1215 = vmatprep.subr.bf16.mxu0 %v1464_v12 }
 0x3cd   :  { %v230_v2 = vpop.f32.mrb[2].mxu0 }
 0x3ce   :  { %v235_v3 = vadd.f32 %v230_v2, %v157_v1  ;;  %v232_v4 = vpop.f32.mrb[3].mxu0 }
 0x3cf   :  { %v236_v7 = vadd.f32 %v232_v4, %v158_v6 }
 0x3d0   :  { %v1059_v5 = vmul.f32 -1.442695, %v235_v3 }
 0x3d1   :  { %v1060_v15 = vmul.f32 -1.442695, %v236_v7 }
 0x3d2   :  { %1337 = vpow2.f32 %v1059_v5 }
 0x3d3   :  { %1339 = vtanh.f32 %v236_v7 }
 0x3dc   :  { %v1338_v8 = vpop.eup %1337 }
 0x3dd   :  { %v243_v9 = vadd.f32 1.0, %v1338_v8  ;;  %v1340_v10 = vpop.eup %1339 }
 0x3df   :  { %1341 = vrcp.f32 %v243_v9 }
 0x3e0   :  { %1343 = vpow2.f32 %v1060_v15 }
 0x3e9   :  { %v1342_v13 = vpop.eup %1341 }
 0x3ea   :  { %v251_v14 = vmul.f32 %v1342_v13, %v1340_v10  ;;  %v1344_v18 = vpop.eup %1343  ;;  %v250_v20 = vmul.f32 %v1342_v13, %v154_v60  ;;  %v463_v13 = vld [vmem:[%s1732_s0 + $0x50] sm:$0xff] }
 0x3eb   :  { %v244_v19 = vadd.f32 1.0, %v1344_v18 }
 0x3ec   :  { %253 = vrot.lane.b32.xlu0 %v251_v14, %s1421_s16 }
 0x3ed   :  { %1345 = vrcp.f32 %v244_v19 }
 0x3f7   :  { %v1346_v25 = vpop.eup %1345 }
 0x45e   :  { %v254_v21 = vpop.permute.xlu0 %253 }
 0x45f   :  { %v256_v24 = vadd.f32 %v254_v21, %v250_v20  ;;  %v464_v20 = vld [vmem:[%s1732_s0 + $0x58] sm:$0xff] }
 0x461   :  { %1347 = vtanh.f32 %v256_v24 }
 0x46b   :  { %v1348_v26 = vpop.eup %1347 }
 0x46c   :  { %v258_v27 = vmul.f32 %v1348_v26, %v1346_v25 }
 0x46e   :  { %262 = vrot.lane.b32.xlu1 %v258_v27, %s1421_s16 }
 0x4e0   :  { %v263_v30 = vpop.permute.xlu1 %262 }
 0x4e1   :  { %1061 = vmatmul.mubr.msk.f32.vlgmr.msra.gmra.mrb[4].mxu0 %vm59_vm0, %v263_v30 }
 0x4e2   :  { %1217 = vmatpush1.bf16.msra.mxu0 %v1475_v16  ;;  %534 = vmatprep.mubr.f32.mxu0 %v1422_v11 }
 0x4e3   :  { %1219 = vmatprep.subr.bf16.mxu0 %v1477_v17 }
 0x4e6   :  { %1221 = vmatpush1.bf16.msra.mxu0 %v1494_v22 }
 0x4e7   :  { %1223 = vmatprep.subr.bf16.mxu0 %v1498_v23 }
 0x4ea   :  { %1225 = vmatpush1.bf16.msra.mxu0 %v1514_v28 }
 0x4eb   :  { %1227 = vmatprep.subr.bf16.mxu0 %v1518_v29 }
 0x4ee   :  { %1229 = vmatpush1.bf16.msra.mxu0 %v1528_v32 }
 0x4ef   :  { %1247 = vmatprep.subr.bf16.mxu0 %v1464_v12 }
 0x5b4   :  { %v332_v33 = vpop.f32.mrb[4].mxu0 }
 0x5b5   :  { %v337_v34 = vadd.f32 %v332_v33, %v259_v31  ;;  %v334_v35 = vpop.f32.mrb[5].mxu0 }
 0x5b6   :  { %v338_v38 = vadd.f32 %v334_v35, %v260_v37 }
 0x5b7   :  { %v1062_v36 = vmul.f32 -1.442695, %v337_v34 }
 0x5b8   :  { %v1063_v44 = vmul.f32 -1.442695, %v338_v38 }
 0x5b9   :  { %1349 = vpow2.f32 %v1062_v36 }
 0x5ba   :  { %1351 = vtanh.f32 %v338_v38 }
 0x5c3   :  { %v1350_v39 = vpop.eup %1349 }
 0x5c4   :  { %v345_v40 = vadd.f32 1.0, %v1350_v39  ;;  %v1352_v41 = vpop.eup %1351 }
 0x5c6   :  { %1353 = vrcp.f32 %v345_v40 }
 0x5c7   :  { %1355 = vpow2.f32 %v1063_v44 }
 0x5d0   :  { %v1354_v42 = vpop.eup %1353 }
 0x5d1   :  { %v353_v43 = vmul.f32 %v1354_v42, %v1352_v41  ;;  %v1356_v45 = vpop.eup %1355  ;;  %v352_v47 = vmul.f32 %v1354_v42, %v256_v24  ;;  %v565_v42 = vld [vmem:[%s1732_s0 + $0x60] sm:$0xff] }
 0x5d2   :  { %v346_v46 = vadd.f32 1.0, %v1356_v45 }
 0x5d3   :  { %355 = vrot.lane.b32.xlu0 %v353_v43, %s1421_s16 }
 0x5d4   :  { %1357 = vrcp.f32 %v346_v46 }
 0x5de   :  { %v1358_v50 = vpop.eup %1357 }
 0x645   :  { %v356_v48 = vpop.permute.xlu0 %355 }
 0x646   :  { %v358_v49 = vadd.f32 %v356_v48, %v352_v47 }
 0x648   :  { %1359 = vtanh.f32 %v358_v49 }
 0x652   :  { %v1360_v51 = vpop.eup %1359 }
 0x653   :  { %v360_v52 = vmul.f32 %v1360_v51, %v1358_v50 }
 0x655   :  { %364 = vrot.lane.b32.xlu1 %v360_v52, %s1421_s16 }
 0x6c7   :  { %v365_v53 = vpop.permute.xlu1 %364 }
 0x6c8   :  { %1064 = vmatmul.mubr.msk.f32.vlgmr.msra.gmra.mrb[0].mxu1 %vm59_vm0, %v365_v53 }
 0x6c9   :  { %1233 = vmatpush1.bf16.msra.mxu1 %v1475_v16  ;;  %636 = vmatprep.mubr.f32.mxu1 %v1422_v11 }
 0x6ca   :  { %1235 = vmatprep.subr.bf16.mxu1 %v1477_v17 }
 0x6cd   :  { %1237 = vmatpush1.bf16.msra.mxu1 %v1494_v22 }
 0x6ce   :  { %1239 = vmatprep.subr.bf16.mxu1 %v1498_v23 }
 0x6d1   :  { %1241 = vmatpush1.bf16.msra.mxu1 %v1514_v28 }
 0x6d2   :  { %1243 = vmatprep.subr.bf16.mxu1 %v1518_v29 }
 0x6d5   :  { %1245 = vmatpush1.bf16.msra.mxu1 %v1528_v32 }
 0x6d6   :  { %1263 = vmatprep.subr.bf16.mxu1 %v1464_v12 }
 0x79b   :  { %v434_v55 = vpop.f32.mrb[0].mxu1 }
 0x79c   :  { %v439_v56 = vadd.f32 %v434_v55, %v361_v54  ;;  %v436_v57 = vpop.f32.mrb[1].mxu1 }
 0x79d   :  { %v440_v60 = vadd.f32 %v436_v57, %v362_v59  ;;  %v667_v57 = vld [vmem:[%s1732_s0 + $0x70] sm:$0xff] }
 0x79e   :  { %v1065_v58 = vmul.f32 -1.442695, %v439_v56 }
 0x79f   :  { %v1066_v1 = vmul.f32 -1.442695, %v440_v60 }
 0x7a0   :  { %1361 = vpow2.f32 %v1065_v58 }
 0x7a1   :  { %1363 = vtanh.f32 %v440_v60 }
 0x7aa   :  { %v1362_v61 = vpop.eup %1361 }
 0x7ab   :  { %v447_v62 = vadd.f32 1.0, %v1362_v61  ;;  %v1364_v63 = vpop.eup %1363 }
 0x7ad   :  { %1365 = vrcp.f32 %v447_v62  ;;  %v668_v62 = vld [vmem:[%s1732_s0 + $0x78] sm:$0xff] }
 0x7ae   :  { %1367 = vpow2.f32 %v1066_v1 }
 0x7b7   :  { %v1366_v12 = vpop.eup %1365 }
 0x7b8   :  { %v455_v0 = vmul.f32 %v1366_v12, %v1364_v63  ;;  %v1368_v2 = vpop.eup %1367  ;;  %v454_v4 = vmul.f32 %v1366_v12, %v358_v49 }
 0x7b9   :  { %v448_v3 = vadd.f32 1.0, %v1368_v2 }
 0x7ba   :  { %457 = vrot.lane.b32.xlu0 %v455_v0, %s1421_s16 }
 0x7bb   :  { %1369 = vrcp.f32 %v448_v3 }
 0x7c5   :  { %v1370_v7 = vpop.eup %1369 }
 0x82c   :  { %v458_v5 = vpop.permute.xlu0 %457 }
 0x82d   :  { %v460_v6 = vadd.f32 %v458_v5, %v454_v4 }
 0x82f   :  { %1371 = vtanh.f32 %v460_v6 }
 0x839   :  { %v1372_v8 = vpop.eup %1371 }
 0x83a   :  { %v462_v9 = vmul.f32 %v1372_v8, %v1370_v7 }
 0x83c   :  { %466 = vrot.lane.b32.xlu1 %v462_v9, %s1421_s16 }
 0x8ae   :  { %v467_v10 = vpop.permute.xlu1 %466 }
 0x8af   :  { %1067 = vmatmul.mubr.msk.f32.vlgmr.msra.gmra.mrb[6].mxu0 %vm59_vm0, %v467_v10 }
 0x8b0   :  { %1249 = vmatpush1.bf16.msra.mxu0 %v1475_v16  ;;  %738 = vmatprep.mubr.f32.mxu0 %v1422_v11 }
 0x8b1   :  { %1251 = vmatprep.subr.bf16.mxu0 %v1477_v17 }
 0x8b4   :  { %1253 = vmatpush1.bf16.msra.mxu0 %v1494_v22 }
 0x8b5   :  { %1255 = vmatprep.subr.bf16.mxu0 %v1498_v23 }
 0x8b8   :  { %1257 = vmatpush1.bf16.msra.mxu0 %v1514_v28 }
 0x8b9   :  { %1259 = vmatprep.subr.bf16.mxu0 %v1518_v29 }
 0x8bc   :  { %1261 = vmatpush1.bf16.msra.mxu0 %v1528_v32 }
 0x982   :  { %v536_v14 = vpop.f32.mrb[6].mxu0 }
 0x983   :  { %v541_v15 = vadd.f32 %v536_v14, %v463_v13  ;;  %v538_v18 = vpop.f32.mrb[7].mxu0 }
 0x984   :  { %v542_v21 = vadd.f32 %v538_v18, %v464_v20  ;;  %v769_v18 = vld [vmem:[%s1732_s0 + $0x80] sm:$0xff] }
 0x985   :  { %v1068_v19 = vmul.f32 -1.442695, %v541_v15 }
 0x986   :  { %v1069_v31 = vmul.f32 -1.442695, %v542_v21 }
 0x987   :  { %1373 = vpow2.f32 %v1068_v19 }
 0x988   :  { %1375 = vtanh.f32 %v542_v21 }
 0x991   :  { %v1374_v24 = vpop.eup %1373 }
 0x992   :  { %v549_v25 = vadd.f32 1.0, %v1374_v24  ;;  %v1376_v26 = vpop.eup %1375 }
 0x994   :  { %1377 = vrcp.f32 %v549_v25  ;;  %v770_v25 = vld [vmem:[%s1732_s0 + $0x88] sm:$0xff] }
 0x995   :  { %1379 = vpow2.f32 %v1069_v31 }
 0x99e   :  { %v1378_v27 = vpop.eup %1377 }
 0x99f   :  { %v557_v30 = vmul.f32 %v1378_v27, %v1376_v26  ;;  %v1380_v33 = vpop.eup %1379  ;;  %v556_v35 = vmul.f32 %v1378_v27, %v460_v6 }
 0x9a0   :  { %v550_v34 = vadd.f32 1.0, %v1380_v33 }
 0x9a1   :  { %559 = vrot.lane.b32.xlu0 %v557_v30, %s1421_s16 }
 0x9a2   :  { %1381 = vrcp.f32 %v550_v34 }
 0x9ac   :  { %v1382_v38 = vpop.eup %1381 }
 0xa13   :  { %v560_v36 = vpop.permute.xlu0 %559 }
 0xa14   :  { %v562_v37 = vadd.f32 %v560_v36, %v556_v35  ;;  %v1423_v35 = vmov 0.0|0.0   ;;  %v871_v36 = vld [vmem:[%s1734_s2] sm:$0xff] }
 0xa15   :  { %1278 = vmatprep.subr.bf16.mxu0 %v1423_v35 }
 0xa16   :  { %1383 = vtanh.f32 %v562_v37 }
 0xa20   :  { %v1384_v39 = vpop.eup %1383 }
 0xa21   :  { %v564_v40 = vmul.f32 %v1384_v39, %v1382_v38  ;;  %v873_v38 = vld [vmem:[%s1734_s2 + $0x10] sm:$0xff] }
 0xa23   :  { %568 = vrot.lane.b32.xlu1 %v564_v40, %s1421_s16  ;;  %v874_v40 = vld [vmem:[%s1734_s2 + $0x18] sm:$0xff] }
 0xa95   :  { %v569_v41 = vpop.permute.xlu1 %568 }
 0xa96   :  { %1070 = vmatmul.mubr.msk.f32.vlgmr.msra.gmra.mrb[2].mxu1 %vm59_vm0, %v569_v41  ;;  %v1282_v41 = vpack.c.bf16 %v874_v40, %v873_v38 }
 0xa97   :  { %1265 = vmatpush1.bf16.msra.mxu1 %v1475_v16  ;;  %840 = vmatprep.mubr.f32.mxu1 %v1422_v11 }
 0xa98   :  { %1267 = vmatprep.subr.bf16.mxu1 %v1477_v17  ;;  %v566_v17 = vld [vmem:[%s1732_s0 + $0x68] sm:$0xff] }
 0xa9b   :  { %1269 = vmatpush1.bf16.msra.mxu1 %v1494_v22 }
 0xa9c   :  { %1271 = vmatprep.subr.bf16.mxu1 %v1498_v23 }
 0xa9f   :  { %1273 = vmatpush1.bf16.msra.mxu1 %v1514_v28 }
 0xaa0   :  { %1275 = vmatprep.subr.bf16.mxu1 %v1518_v29 }
 0xaa3   :  { %1277 = vmatpush1.bf16.msra.mxu1 %v1528_v32 }
 0xaa4   :  { %1284 = vmatprep.subr.bf16.mxu1 %v1423_v35 }
 0xb69   :  { %v638_v43 = vpop.f32.mrb[2].mxu1 }
 0xb6a   :  { %v643_v16 = vadd.f32 %v638_v43, %v565_v42  ;;  %v640_v44 = vpop.f32.mrb[3].mxu1 }
 0xb6b   :  { %v644_v22 = vadd.f32 %v640_v44, %v566_v17 }
 0xb6c   :  { %v1071_v45 = vmul.f32 -1.442695, %v643_v16 }
 0xb6d   :  { %v1072_v47 = vmul.f32 -1.442695, %v644_v22 }
 0xb6e   :  { %1385 = vpow2.f32 %v1071_v45 }
 0xb6f   :  { %1387 = vtanh.f32 %v644_v22  ;;  %v875_v22 = vld [vmem:[%s1734_s2 + $0x20] sm:$0xff] }
 0xb78   :  { %v1386_v23 = vpop.eup %1385 }
 0xb79   :  { %v651_v28 = vadd.f32 1.0, %v1386_v23  ;;  %v1388_v29 = vpop.eup %1387  ;;  %v877_v23 = vld [vmem:[%s1734_s2 + $0x30] sm:$0xff] }
 0xb7b   :  { %1389 = vrcp.f32 %v651_v28 }
 0xb7c   :  { %1391 = vpow2.f32 %v1072_v47  ;;  %v880_v47 = vld [vmem:[%s1734_s2 + $0x48] sm:$0xff] }
 0xb85   :  { %v1390_v32 = vpop.eup %1389 }
 0xb86   :  { %v659_v46 = vmul.f32 %v1390_v32, %v1388_v29  ;;  %v1392_v48 = vpop.eup %1391  ;;  %v658_v50 = vmul.f32 %v1390_v32, %v562_v37  ;;  %v872_v37 = vld [vmem:[%s1734_s2 + $0x8] sm:$0xff]  ;;  %v878_v29 = vld [vmem:[%s1734_s2 + $0x38] sm:$0xff] }
 0xb87   :  { %v652_v49 = vadd.f32 1.0, %v1392_v48  ;;  %v1279_v39 = vpack.c.bf16 %v872_v37, %v871_v36  ;;  %v1288_v32 = vpack.c.bf16 %v878_v29, %v877_v23 }
 0xb88   :  { %661 = vrot.lane.b32.xlu0 %v659_v46, %s1421_s16  ;;  %v879_v46 = vld [vmem:[%s1734_s2 + $0x40] sm:$0xff] }
 0xb89   :  { %1393 = vrcp.f32 %v652_v49  ;;  %v1291_v48 = vpack.c.bf16 %v880_v47, %v879_v46  ;;  %v881_v49 = vld [vmem:[%s1734_s2 + $0x50] sm:$0xff] }
 0xb93   :  { %v1394_v53 = vpop.eup %1393 }
 0xbfa   :  { %v662_v51 = vpop.permute.xlu0 %661 }
 0xbfb   :  { %v664_v52 = vadd.f32 %v662_v51, %v658_v50  ;;  %v882_v50 = vld [vmem:[%s1734_s2 + $0x58] sm:$0xff] }
 0xbfd   :  { %1395 = vtanh.f32 %v664_v52 }
 0xc07   :  { %v1396_v54 = vpop.eup %1395 }
 0xc08   :  { %v666_v55 = vmul.f32 %v1396_v54, %v1394_v53  ;;  %v1294_v54 = vpack.c.bf16 %v882_v50, %v881_v49 }
 0xc0a   :  { %670 = vrot.lane.b32.xlu1 %v666_v55, %s1421_s16  ;;  %v883_v55 = vld [vmem:[%s1734_s2 + $0x60] sm:$0xff] }
 0xc7c   :  { %v671_v56 = vpop.permute.xlu1 %670 }
 0xc7d   :  { %1073 = vmatmul.mubr.msk.f32.vlgmr.msra.gmra.mrb[8].mxu0 %vm59_vm0, %v671_v56  ;;  %v884_v56 = vld [vmem:[%s1734_s2 + $0x68] sm:$0xff] }
 0xc7e   :  { %1112 = vmatprep.mubr.msk.f32.mxu0 %vm1424_vm1, %v1422_v11  ;;  %1280 = vmatpush3.bf16.msra.mxu0 %v1279_v39 }
 0xc7f   :  { %1281 = vmatprep.subr.bf16.mxu0 %v1423_v35 }
 0xc82   :  { %1283 = vmatpush3.bf16.msra.mxu0 %v1282_v41 }
 0xd50   :  { %v740_v58 = vpop.f32.mrb[8].mxu0 }
 0xd51   :  { %v745_v59 = vadd.f32 %v740_v58, %v667_v57  ;;  %v742_v60 = vpop.f32.mrb[9].mxu0  ;;  %v1297_v57 = vpack.c.bf16 %v884_v56, %v883_v55  ;;  %v885_v58 = vld [vmem:[%s1734_s2 + $0x70] sm:$0xff] }
 0xd52   :  { %v746_v63 = vadd.f32 %v742_v60, %v668_v62  ;;  %v888_v62 = vld [vmem:[%s1734_s2 + $0x88] sm:$0xff] }
 0xd53   :  { %v1074_v61 = vmul.f32 -1.442695, %v745_v59  ;;  %v886_v59 = vld [vmem:[%s1734_s2 + $0x78] sm:$0xff] }
 0xd54   :  { %v1075_v4 = vmul.f32 -1.442695, %v746_v63  ;;  %v1300_v60 = vpack.c.bf16 %v886_v59, %v885_v58 }
 0xd55   :  { %1397 = vpow2.f32 %v1074_v61  ;;  %v887_v61 = vld [vmem:[%s1734_s2 + $0x80] sm:$0xff] }
 0xd56   :  { %1399 = vtanh.f32 %v746_v63  ;;  %v1303_v63 = vpack.c.bf16 %v888_v62, %v887_v61 }
 0xd5f   :  { %v1398_v12 = vpop.eup %1397 }
 0xd60   :  { %v753_v0 = vadd.f32 1.0, %v1398_v12  ;;  %v1400_v1 = vpop.eup %1399 }
 0xd62   :  { %1401 = vrcp.f32 %v753_v0  ;;  %v889_v0 = vld [vmem:[%s1734_s2 + $0x90] sm:$0xff] }
 0xd63   :  { %1403 = vpow2.f32 %v1075_v4 }
 0xd6c   :  { %v1402_v2 = vpop.eup %1401 }
 0xd6d   :  { %v761_v3 = vmul.f32 %v1402_v2, %v1400_v1  ;;  %v1404_v5 = vpop.eup %1403  ;;  %v760_v7 = vmul.f32 %v1402_v2, %v664_v52  ;;  %v890_v1 = vld [vmem:[%s1734_s2 + $0x98] sm:$0xff] }
 0xd6e   :  { %v754_v6 = vadd.f32 1.0, %v1404_v5  ;;  %v1306_v2 = vpack.c.bf16 %v890_v1, %v889_v0 }
 0xd6f   :  { %763 = vrot.lane.b32.xlu0 %v761_v3, %s1421_s16  ;;  %v1079_v3 = vld [vmem:[%s1734_s2 + $0xa0] ss:$0 sm:$0xff] }
 0xd70   :  { %1405 = vrcp.f32 %v754_v6 }
 0xd7a   :  { %v1406_v10 = vpop.eup %1405 }
 0xde1   :  { %v764_v8 = vpop.permute.xlu0 %763 }
 0xde2   :  { %v766_v9 = vadd.f32 %v764_v8, %v760_v7  ;;  %v1081_v8 = vld [vmem:[%s1734_s2 + $0xa1] ss:$0 sm:$0xff] }
 0xde4   :  { %1407 = vtanh.f32 %v766_v9 }
 0xdee   :  { %v1408_v13 = vpop.eup %1407 }
 0xdef   :  { %v768_v14 = vmul.f32 %v1408_v13, %v1406_v10 }
 0xdf1   :  { %772 = vrot.lane.b32.xlu1 %v768_v14, %s1421_s16 }
 0xe63   :  { %v773_v15 = vpop.permute.xlu1 %772 }
 0xe64   :  { %1076 = vmatmul.mubr.msk.f32.vlgmr.msra.gmra.mrb[4].mxu1 %vm59_vm0, %v773_v15 }
 0xe65   :  { %1147 = vmatprep.mubr.msk.f32.mxu1 %vm1424_vm1, %v1422_v11  ;;  %v876_v11 = vld [vmem:[%s1734_s2 + $0x28] sm:$0xff] }
 0xe66   :  { %v1285_v28 = vpack.c.bf16 %v876_v11, %v875_v22 }
 0xe68   :  { %1286 = vmatpush3.bf16.msra.mxu1 %v1285_v28 }
 0xe69   :  { %1287 = vmatprep.subr.bf16.mxu1 %v1423_v35 }
 0xe6c   :  { %1289 = vmatpush3.bf16.msra.mxu1 %v1288_v32 }
 0xe6d   :  { %1290 = vmatprep.subr.bf16.mxu1 %v1423_v35 }
 0xe70   :  { %1292 = vmatpush3.bf16.msra.mxu1 %v1291_v48 }
 0xe71   :  { %1293 = vmatprep.subr.bf16.mxu1 %v1423_v35 }
 0xe74   :  { %1295 = vmatpush3.bf16.msra.mxu1 %v1294_v54 }
 0xe75   :  { %1296 = vmatprep.subr.bf16.mxu1 %v1423_v35 }
 0xe78   :  { %1298 = vmatpush3.bf16.msra.mxu1 %v1297_v57 }
 0xe79   :  { %1299 = vmatprep.subr.bf16.mxu1 %v1423_v35 }
 0xe7c   :  { %1301 = vmatpush3.bf16.msra.mxu1 %v1300_v60 }
 0xe7d   :  { %1302 = vmatprep.subr.bf16.mxu1 %v1423_v35 }
 0xe80   :  { %1304 = vmatpush3.bf16.msra.mxu1 %v1303_v63 }
 0xe81   :  { %1305 = vmatprep.subr.bf16.mxu1 %v1423_v35 }
 0xe84   :  { %1307 = vmatpush3.bf16.msra.mxu1 %v1306_v2 }
 0xf37   :  { %v842_v19 = vpop.f32.mrb[4].mxu1 }
 0xf38   :  { %v847_v20 = vadd.f32 %v842_v19, %v769_v18  ;;  %v844_v21 = vpop.f32.mrb[5].mxu1 }
 0xf39   :  { %v848_v26 = vadd.f32 %v844_v21, %v770_v25 }
 0xf3a   :  { %v1077_v24 = vmul.f32 -1.442695, %v847_v20 }
 0xf3b   :  { %v1078_v42 = vmul.f32 -1.442695, %v848_v26 }
 0xf3c   :  { %1409 = vpow2.f32 %v1077_v24 }
 0xf3d   :  { %1411 = vtanh.f32 %v848_v26 }
 0xf46   :  { %v1410_v27 = vpop.eup %1409 }
 0xf47   :  { %v855_v30 = vadd.f32 1.0, %v1410_v27  ;;  %v1412_v31 = vpop.eup %1411 }
 0xf49   :  { %1413 = vrcp.f32 %v855_v30 }
 0xf4a   :  { %1415 = vpow2.f32 %v1078_v42 }
 0xf53   :  { %v1414_v33 = vpop.eup %1413 }
 0xf54   :  { %v863_v34 = vmul.f32 %v1414_v33, %v1412_v31  ;;  %v1416_v43 = vpop.eup %1415  ;;  %v862_v44 = vmul.f32 %v1414_v33, %v766_v9 }
 0xf55   :  { %v856_v16 = vadd.f32 1.0, %v1416_v43 }
 0xf56   :  { %865 = vrot.lane.b32.xlu0 %v863_v34, %s1421_s16 }
 0xf57   :  { %1417 = vrcp.f32 %v856_v16 }
 0xf61   :  { %v1418_v51 = vpop.eup %1417 }
 0xfc8   :  { %v866_v45 = vpop.permute.xlu0 %865 }
 0xfc9   :  { %v868_v17 = vadd.f32 %v866_v45, %v862_v44 }
 0xfcb   :  { %1419 = vtanh.f32 %v868_v17 }
 0xfd5   :  { %v1420_v52 = vpop.eup %1419 }
 0xfd6   :  { %v870_v53 = vmul.f32 %v1420_v52, %v1418_v51 }
 0xfd8   :  { %898 = vrot.lane.b32.xlu1 %v870_v53, %s1425_s26 }
0x104a   :  { %v899_v12 = vpop.permute.xlu1 %898 }
0x104b   :  { %1113 = vmatmul.mubr.msk.f32.vlgmr.msra.gmra.mrb[10].mxu0 %vm900_vm2, %v899_v12 }
0x111e   :  { %v969_v4 = vpop.f32.mrb[10].mxu0 }
0x111f   :  { %v970_v5 = vadd.f32 %v1079_v3, %v969_v4  ;;  %v1114_v6 = vpop.f32.mrb[11].mxu0 }
0x1121   :  { %v973_v7 = vmax.f32 %v970_v5, 0.0 }
0x1123   :  { %1148 = vmatmul.mubr.f32.vlgmr.msra.gmra.mrb[6].mxu1 %v973_v7 }
0x11f6   :  { %v1044_v9 = vpop.f32.mrb[6].mxu1 }
0x11f7   :  { %v1045_v10 = vadd.f32 %v1081_v8, %v1044_v9  ;;  %v1149_v13 = vpop.f32.mrb[7].mxu1 }
0x11f9   :  { %1048 = vst [vmem:[%s1735_s3] sm:$0xff] %v1045_v10 }

</bundles_post_ra>
